<compile_context>
chip_gen: v7x
topology: tpu7x:2x2x1
jax: 0.10.0
libtpu: 0.0.40
codegen_flags: <defaults>
</compile_context>

<pallas_src>
import functools
import math

import jax
import jax.numpy as jnp
from jax.experimental import pallas as pl
from jax.experimental.pallas import tpu as pltpu

BN_EPS = 1e-5


def _round_up(x, m):
    return ((x + m - 1) // m) * m


def _cdiv(a, b):
    return -(-a // b)


def _vmem_budget_bytes():
    """~75% of per-core VMEM (Mosaic needs headroom for internal scratch):
    ~48 MiB on v7x (64 MiB physical), ~96 MiB on v5e/v6e (128 MiB physical)."""
    try:
        cap = int(pltpu.get_tpu_info().vmem_capacity_bytes)
    except Exception:
        cap = 64 * 1024 * 1024  # conservative fallback (v7x-sized)
    return (cap * 3) // 4


def _pick_tn(c_out, tn_req, vmem_budget):
    """Lane-dense output-feature tile width (multiple of 128)."""
    if tn_req is None:
        # Wider tiles on 128-MiB-VMEM parts (v5e/v6e); narrower on v7x (64 MiB).
        tn_req = 512 if vmem_budget >= (72 << 20) else 256
    tn_req = max(128, _round_up(tn_req, 128))
    if c_out % 128 == 0:
        # Prefer a 128-multiple that divides C_out exactly: no column padding,
        # no post-kernel slice/copy of the output.
        tn = 128
        for cand in range(128, min(tn_req, c_out) + 1, 128):
            if c_out % cand == 0:
                tn = cand
    else:
        tn = min(tn_req, _round_up(c_out, 128))
    # Prefer an even number of C_out tiles so the single "parallel" grid axis
    # load-balances across v7x's two TensorCores (harmless on 1-TC chips).
    n_tiles = _cdiv(c_out, tn)
    if n_tiles > 1 and n_tiles % 2 == 1 and tn > 128:
        half = _round_up(tn // 2, 128)
        if _cdiv(c_out, half) % 2 == 0:
            tn = half
    return tn


def _pick_tk(n_pad, c_in_pad, tn, c_bytes, o_bytes, budget, slack):
    """Largest multiple-of-128 divisor of c_in_pad whose K-tiled working set
    fits the VMEM budget (falls back to 128)."""
    best = 128
    m = c_in_pad // 128
    for d in range(1, m + 1):
        if m % d:
            continue
        tk = d * 128
        need = (2 * n_pad * tk * c_bytes        # x tile, double-buffered
                + 2 * tk * tn * c_bytes         # W tile, double-buffered
                + n_pad * tn * 4                # f32 accumulator scratch
                + 2 * n_pad * tn * o_bytes      # out tile, double-buffered
                + slack)
        if need <= budget:
            best = tk
    # TODO(synk): if even tk=128 does not fit (enormous N), the batch axis
    # would also need tiling; not implemented here.
    return best


def _probe_kernel(x_ref, o_ref):
    o_ref[...] = x_ref[...]


@functools.lru_cache(maxsize=None)
def _single_buffer_ok():
    """Probe-compile once: can this JAX/libtpu single-buffer a grid-resident
    input via pipeline_mode=pl.Buffered(1)?  Fall back gracefully if not."""
    try:
        spec = pl.BlockSpec((8, 128), lambda i: (0, 0),
                            pipeline_mode=pl.Buffered(1))
        fn = pl.pallas_call(
            _probe_kernel,
            out_shape=jax.ShapeDtypeStruct((8, 128), jnp.float32),
            grid=(2,),
            in_specs=[spec],
            out_specs=pl.BlockSpec((8, 128), lambda i: (0, 0)),
        )
        jax.jit(fn).lower(jax.ShapeDtypeStruct((8, 128), jnp.float32)).compile()
        return True
    except Exception:
        return False


# --------------------------------------------------------------------------
# Kernels
# --------------------------------------------------------------------------
def _fc_bn_relu_kernel(x_ref, w_ref, gamma_ref, beta_ref, o_ref, *, inv_n,
                       precision):
    """x fully VMEM-resident over C_in; one lane-dense (N, TN) output tile per
    grid step.  W was pre-transposed to (C_in, C_out) -> natural MXU layout."""
    y = jnp.dot(x_ref[...], w_ref[...],
                preferred_element_type=jnp.float32,
                precision=precision)                       # (N, TN) f32

    # BatchNorm1d training-mode stats in ONE sweep over y:
    #   mean = E[y],  var = E[y^2] - mean^2   (biased, matching PyTorch).
    # Zero-padded batch rows contribute 0 to both sums; inv_n = 1/N_real keeps
    # the statistics exact.
    s1 = jnp.sum(y, axis=0, keepdims=True)
    s2 = jnp.sum(y * y, axis=0, keepdims=True)
    mean = s1 * inv_n
    var = jnp.maximum(s2 * inv_n - mean * mean, 0.0)       # guard cancellation

    # Scale/shift epilogue: 2 full-size VALU ops on (N, TN); rsqrt on the EUP.
    scale = gamma_ref[...] * jax.lax.rsqrt(var + BN_EPS)
    shift = beta_ref[...] - mean * scale
    o_ref[...] = jnp.maximum(y * scale + shift, 0.0).astype(o_ref.dtype)


def _fc_bn_relu_ktiled_kernel(x_ref, w_ref, gamma_ref, beta_ref, o_ref,
                              acc_ref, *, inv_n, precision):
    """K-tiled variant for when x does not fit VMEM: (N, TK) x tiles and
    (TK, TN) W tiles streamed over C_in into an f32 accumulator; BN+ReLU
    epilogue under the last k step (full-batch stats stay exact)."""
    k = pl.program_id(1)

    @pl.when(k == 0)
    def _():
        acc_ref[...] = jnp.zeros_like(acc_ref)

    acc_ref[...] += jnp.dot(x_ref[...], w_ref[...],
                            preferred_element_type=jnp.float32,
                            precision=precision)

    @pl.when(k == pl.num_programs(1) - 1)
    def _():
        y = acc_ref[...]
        s1 = jnp.sum(y, axis=0, keepdims=True)
        s2 = jnp.sum(y * y, axis=0, keepdims=True)
        mean = s1 * inv_n
        var = jnp.maximum(s2 * inv_n - mean * mean, 0.0)
        scale = gamma_ref[...] * jax.lax.rsqrt(var + BN_EPS)
        shift = beta_ref[...] - mean * scale
        o_ref[...] = jnp.maximum(y * scale + shift, 0.0).astype(o_ref.dtype)


# --------------------------------------------------------------------------
# Builder (weight prep hoisted out of the per-call path)
# --------------------------------------------------------------------------
def make_fc_block(weight, gamma, beta, *, tn=None, k_tile="auto",
                  compute_dtype=jnp.bfloat16, out_dtype=jnp.float32):
    """Build a fused Linear(bias=False)+BatchNorm1d(train)+ReLU forward.

    All weight-side work (pad, transpose to (C_in, C_out), cast) happens ONCE
    here and is cached on device.

    weight: (C_out, C_in) f32 (PyTorch nn.Linear layout)
    gamma, beta: (C_out,) BatchNorm affine parameters
    tn:     output-feature tile width (multiple of 128); None -> auto per chip
    k_tile: "auto" -> K-tile only if the resident-x working set exceeds the
            VMEM budget; None -> force fully-resident x; int -> force K tiling
    """
    c_out, c_in = weight.shape
    vmem_budget = _vmem_budget_bytes()
    tn_eff = _pick_tn(c_out, tn, vmem_budget)
    c_out_pad = _round_up(c_out, tn_eff)

    if isinstance(k_tile, int):
        k_tile = _round_up(k_tile, 128)
        c_in_pad = _round_up(c_in, k_tile)
    else:
        c_in_pad = _round_up(c_in, 128)

    compute_dtype = jnp.dtype(compute_dtype)
    out_dtype = jnp.dtype(out_dtype)
    c_bytes = compute_dtype.itemsize
    o_bytes = out_dtype.itemsize
    precision = (None if compute_dtype == jnp.dtype(jnp.bfloat16)
                 else jax.lax.Precision.HIGHEST)
    single_buffer_x = _single_buffer_ok()
    slack = 2 * 1024 * 1024  # Mosaic-internal scratch / semaphores

    # ---- one-time weight / affine prep (cached across calls) ----
    w_pad = jnp.pad(jnp.asarray(weight, jnp.float32),
                    ((0, c_out_pad - c_out), (0, c_in_pad - c_in)))
    w_t = jnp.asarray(w_pad.T, dtype=compute_dtype)          # (C_in_pad, C_out_pad)
    gamma_p = jnp.pad(jnp.asarray(gamma, jnp.float32), (0, c_out_pad - c_out),
                      constant_values=1.0).reshape(1, c_out_pad)
    beta_p = jnp.pad(jnp.asarray(beta, jnp.float32),
                     (0, c_out_pad - c_out)).reshape(1, c_out_pad)

    def _x_resident_spec(n_pad):
        index_map = lambda j: (0, 0)
        if single_buffer_x:
            # x's block index never changes across the C_out grid: one VMEM
            # buffer suffices (halves the largest resident allocation).
            return pl.BlockSpec((n_pad, c_in_pad), index_map,
                                pipeline_mode=pl.Buffered(1))
        return pl.BlockSpec((n_pad, c_in_pad), index_map)

    def _forward(x):
        if x.ndim != 2 or x.shape[1] != c_in:
            raise ValueError(f"expected (N, {c_in}) input, got {x.shape}")
        n = x.shape[0]
        n_pad = _round_up(n, 8)
        inv_n = 1.0 / float(n)  # zero-padded rows contribute nothing to sums

        x_c = x.astype(compute_dtype)
        if n_pad != n or c_in_pad != c_in:
            x_c = jnp.pad(x_c, ((0, n_pad - n), (0, c_in_pad - c_in)))

        # Path selection from a static VMEM estimate (shapes are static here).
        tk = k_tile
        if tk == "auto":
            x_mult = 1 if single_buffer_x else 2
            resident = (x_mult * n_pad * c_in_pad * c_bytes   # resident x
                        + 2 * c_in_pad * tn_eff * c_bytes     # W tile (dbl-buf)
                        + 2 * n_pad * tn_eff * o_bytes        # out tile (dbl-buf)
                        + slack)
            tk = None if resident <= vmem_budget else _pick_tk(
                n_pad, c_in_pad, tn_eff, c_bytes, o_bytes, vmem_budget, slack)

        grid_j = c_out_pad // tn_eff

        if tk is None:
            out = pl.pallas_call(
                functools.partial(_fc_bn_relu_kernel, inv_n=inv_n,
                                  precision=precision),
                out_shape=jax.ShapeDtypeStruct((n_pad, c_out_pad), out_dtype),
                grid=(grid_j,),
                in_specs=[
                    _x_resident_spec(n_pad),
                    pl.BlockSpec((c_in_pad, tn_eff), lambda j: (0, j)),
                    pl.BlockSpec((1, tn_eff), lambda j: (0, j)),
                    pl.BlockSpec((1, tn_eff), lambda j: (0, j)),
                ],
                out_specs=pl.BlockSpec((n_pad, tn_eff), lambda j: (0, j)),
                compiler_params=pltpu.CompilerParams(
                    dimension_semantics=("parallel",),
                    vmem_limit_bytes=vmem_budget,
                ),
            )(x_c, w_t, gamma_p, beta_p)
        else:
            grid_k = c_in_pad // tk
            out = pl.pallas_call(
                functools.partial(_fc_bn_relu_ktiled_kernel, inv_n=inv_n,
                                  precision=precision),
                out_shape=jax.ShapeDtypeStruct((n_pad, c_out_pad), out_dtype),
                grid=(grid_j, grid_k),
                in_specs=[
                    pl.BlockSpec((n_pad, tk), lambda j, k: (0, k)),
                    pl.BlockSpec((tk, tn_eff), lambda j, k: (k, j)),
                    pl.BlockSpec((1, tn_eff), lambda j, k: (0, j)),
                    pl.BlockSpec((1, tn_eff), lambda j, k: (0, j)),
                ],
                out_specs=pl.BlockSpec((n_pad, tn_eff), lambda j, k: (0, j)),
                scratch_shapes=[pltpu.VMEM((n_pad, tn_eff), jnp.float32)],
                compiler_params=pltpu.CompilerParams(
                    dimension_semantics=("parallel", "arbitrary"),
                    vmem_limit_bytes=vmem_budget,
                ),
            )(x_c, w_t, gamma_p, beta_p)

        if n_pad != n or c_out_pad != c_out:
            out = out[:n, :c_out]
        return out

    return jax.jit(_forward)


# --------------------------------------------------------------------------
# Reference + demo
# --------------------------------------------------------------------------
def _reference(x, weight, gamma, beta, *, quantize_bf16):
    """Pure-JAX FcBlock reference (PyTorch training-mode BatchNorm1d)."""
    if quantize_bf16:
        x = x.astype(jnp.bfloat16).astype(jnp.float32)
        weight = weight.astype(jnp.bfloat16).astype(jnp.float32)
    y = x @ weight.T
    m = y.mean(axis=0, keepdims=True)
    v = ((y - m) ** 2).mean(axis=0, keepdims=True)   # biased variance
    return jnp.maximum((y - m) * jax.lax.rsqrt(v + BN_EPS) * gamma + beta, 0.0)


if __name__ == "__main__":
    keys = jax.random.split(jax.random.PRNGKey(0), 8)

    # ---- aligned shapes: batch=32, in=256, out=256 (2 feature tiles @ tn=128)
    N, C_IN, C_OUT = 32, 256, 256
    x = jax.random.normal(keys[0], (N, C_IN), dtype=jnp.float32)
    bound = 1.0 / math.sqrt(C_IN)
    weight = jax.random.uniform(keys[1], (C_OUT, C_IN), jnp.float32, -bound, bound)
    gamma = 1.0 + 0.1 * jax.random.normal(keys[2], (C_OUT,), jnp.float32)
    beta = 0.1 * jax.random.normal(keys[3], (C_OUT,), jnp.float32)

    fwd = make_fc_block(weight, gamma, beta, tn=128)          # resident-x path
    out = jax.block_until_ready(fwd(x))
    assert out.shape == (N, C_OUT)

    ref_q = _reference(x, weight, gamma, beta, quantize_bf16=True)
    ref_f = _reference(x, weight, gamma, beta, quantize_bf16=False)
    assert jnp.allclose(out, ref_q, atol=1e-3, rtol=1e-3), "resident vs bf16 ref"
    assert jnp.allclose(out, ref_f, atol=5e-2, rtol=5e-2), "resident vs f32 ref"

    # ---- K-tiled accumulator path (auto-selected on v7x for large N*C_in;
    #      forced here with tk=128 -> 2 K steps to exercise it) ----
    fwd_k = make_fc_block(weight, gamma, beta, tn=128, k_tile=128)
    out_k = jax.block_until_ready(fwd_k(x))
    assert jnp.allclose(out_k, ref_q, atol=1e-3, rtol=1e-3), "K-tiled vs bf16 ref"

    # ---- unaligned shapes: batch=10, in=200, out=264 (zero-pad on all axes)
    N2, CI2, CO2 = 10, 200, 264
    x2 = jax.random.normal(keys[4], (N2, CI2), jnp.float32)
    bound2 = 1.0 / math.sqrt(CI2)
    weight2 = jax.random.uniform(keys[5], (CO2, CI2), jnp.float32, -bound2, bound2)
    gamma2 = 1.0 + 0.1 * jax.random.normal(keys[6], (CO2,), jnp.float32)
    beta2 = 0.1 * jax.random.normal(keys[7], (CO2,), jnp.float32)

    fwd2 = make_fc_block(weight2, gamma2, beta2, tn=128)
    out2 = jax.block_until_ready(fwd2(x2))
    assert out2.shape == (N2, CO2)
    ref2_q = _reference(x2, weight2, gamma2, beta2, quantize_bf16=True)
    assert jnp.allclose(out2, ref2_q, atol=1e-3, rtol=1e-3), "padded vs bf16 ref"

    print("KERNEL_OK")
</pallas_src>

<mosaic_0001>
module attributes {stable_mosaic.version = 11 : i64} {
  func.func @_fc_bn_relu_kernel(%arg0: i32, %arg1: memref<32x256xbf16, #tpu.memory_space<vmem>>, %arg2: memref<256x128xbf16, #tpu.memory_space<vmem>>, %arg3: memref<1x128xf32, #tpu.memory_space<vmem>>, %arg4: memref<1x128xf32, #tpu.memory_space<vmem>>, %arg5: memref<32x128xf32, #tpu.memory_space<vmem>>) attributes {dimension_semantics = [#tpu.dimension_semantics<parallel>], iteration_bounds = array<i64: 2>, scalar_prefetch = 0 : i64, scratch_operands = 0 : i64, tpu.core_type = #tpu.core_type<tc>, window_params = [{pipeline_mode = #tpu.pipeline_mode<synchronous>, transform_indices = @transform_0, window_bounds = array<i64: 32, 256>}, {transform_indices = @transform_1, window_bounds = array<i64: 256, 128>}, {transform_indices = @transform_2, window_bounds = array<i64: 1, 128>}, {transform_indices = @transform_3, window_bounds = array<i64: 1, 128>}, {transform_indices = @transform_4, window_bounds = array<i64: 32, 128>}]} {
    %c0 = arith.constant 0 : index
    %c0_0 = arith.constant 0 : index
    %0 = vector.load %arg1[%c0, %c0_0] : memref<32x256xbf16, #tpu.memory_space<vmem>>, vector<32x256xbf16>
    %c0_1 = arith.constant 0 : index
    %c0_2 = arith.constant 0 : index
    %1 = vector.load %arg2[%c0_1, %c0_2] : memref<256x128xbf16, #tpu.memory_space<vmem>>, vector<256x128xbf16>
    %cst = arith.constant dense<0.000000e+00> : vector<32x128xf32>
    %2 = tpu.matmul %0, %1, %cst {dimension_numbers = #tpu.dot_dimension_numbers<[1], [0], [0], [1], [0, 0, 1, 1], [], []>} : vector<32x256xbf16>, vector<256x128xbf16>, vector<32x128xf32> -> vector<32x128xf32>
    %cst_3 = arith.constant dense<0.000000e+00> : vector<128xf32>
    %3 = vector.multi_reduction <add>, %2, %cst_3 [0] : vector<32x128xf32> to vector<128xf32>
    %4 = vector.shape_cast %3 : vector<128xf32> to vector<1x128xf32>
    %5 = arith.mulf %2, %2 : vector<32x128xf32>
    %cst_4 = arith.constant dense<0.000000e+00> : vector<128xf32>
    %6 = vector.multi_reduction <add>, %5, %cst_4 [0] : vector<32x128xf32> to vector<128xf32>
    %7 = vector.shape_cast %6 : vector<128xf32> to vector<1x128xf32>
    %cst_5 = arith.constant 3.125000e-02 : f32
    %8 = vector.broadcast %cst_5 : f32 to vector<1x128xf32>
    %9 = arith.mulf %4, %8 : vector<1x128xf32>
    %cst_6 = arith.constant 3.125000e-02 : f32
    %10 = vector.broadcast %cst_6 : f32 to vector<1x128xf32>
    %11 = arith.mulf %7, %10 : vector<1x128xf32>
    %12 = arith.mulf %9, %9 : vector<1x128xf32>
    %13 = arith.subf %11, %12 : vector<1x128xf32>
    %cst_7 = arith.constant 0.000000e+00 : f32
    %14 = vector.broadcast %cst_7 : f32 to vector<1x128xf32>
    %15 = arith.maximumf %13, %14 : vector<1x128xf32>
    %c0_8 = arith.constant 0 : index
    %c0_9 = arith.constant 0 : index
    %16 = vector.load %arg3[%c0_8, %c0_9] : memref<1x128xf32, #tpu.memory_space<vmem>>, vector<1x128xf32>
    %cst_10 = arith.constant 9.99999974E-6 : f32
    %17 = vector.broadcast %cst_10 : f32 to vector<1x128xf32>
    %18 = arith.addf %15, %17 : vector<1x128xf32>
    %19 = math.rsqrt %18 : vector<1x128xf32>
    %20 = arith.mulf %16, %19 : vector<1x128xf32>
    %c0_11 = arith.constant 0 : index
    %c0_12 = arith.constant 0 : index
    %21 = vector.load %arg4[%c0_11, %c0_12] : memref<1x128xf32, #tpu.memory_space<vmem>>, vector<1x128xf32>
    %22 = arith.mulf %9, %20 : vector<1x128xf32>
    %23 = arith.subf %21, %22 : vector<1x128xf32>
    %24 = vector.broadcast %20 : vector<1x128xf32> to vector<32x128xf32>
    %25 = arith.mulf %2, %24 : vector<32x128xf32>
    %26 = vector.broadcast %23 : vector<1x128xf32> to vector<32x128xf32>
    %27 = arith.addf %25, %26 : vector<32x128xf32>
    %cst_13 = arith.constant 0.000000e+00 : f32
    %28 = vector.broadcast %cst_13 : f32 to vector<32x128xf32>
    %29 = arith.maximumf %27, %28 : vector<32x128xf32>
    %c0_14 = arith.constant 0 : index
    %c0_15 = arith.constant 0 : index
    %30 = vector.load %arg5[%c0_14, %c0_15] : memref<32x128xf32, #tpu.memory_space<vmem>>, vector<32x128xf32>
    tpu.vector_store %arg5[%c0_14, %c0_15], %29 {strides = array<i32>} : memref<32x128xf32, #tpu.memory_space<vmem>>, vector<32x128xf32>,
    return
  }
  func.func @transform_0(%arg0: i32) -> (i32, i32) {
    %c0_i32 = arith.constant 0 : i32
    %c0_i32_0 = arith.constant 0 : i32
    %c0_i32_1 = arith.constant 0 : i32
    return %c0_i32, %c0_i32_0 : i32, i32
  }
  func.func @transform_1(%arg0: i32) -> (i32, i32) {
    %c0_i32 = arith.constant 0 : i32
    %c0_i32_0 = arith.constant 0 : i32
    return %c0_i32, %arg0 : i32, i32
  }
  func.func @transform_2(%arg0: i32) -> (i32, i32) {
    %c0_i32 = arith.constant 0 : i32
    %c0_i32_0 = arith.constant 0 : i32
    return %c0_i32, %arg0 : i32, i32
  }
  func.func @transform_3(%arg0: i32) -> (i32, i32) {
    %c0_i32 = arith.constant 0 : i32
    %c0_i32_0 = arith.constant 0 : i32
    return %c0_i32, %arg0 : i32, i32
  }
  func.func @transform_4(%arg0: i32) -> (i32, i32) {
    %c0_i32 = arith.constant 0 : i32
    %c0_i32_0 = arith.constant 0 : i32
    return %c0_i32, %arg0 : i32, i32
  }
}

</mosaic_0001>

<bundles_post_ra>
// kernel: _forward.1
= control target key start
LH: loop header
LB: loop body
LE: loop exit
PB: predicated region body
PF: predicated region fallthrough
CT: control target
= control target key end

     0   :  { %9 = vsyncpa [#allocation4], 0  ;;  %s1205_s0 = inlined_call_operand.vmem [shape: bf16[32,256], index: 0, kind: input, shape index: {}]   ;;  %s1206_s1 = inlined_call_operand.vmem [shape: bf16[256,256], index: 1, kind: input, shape index: {}]   ;;  %s1207_s2 = inlined_call_operand.vmem [shape: f32[1,256], index: 2, kind: input, shape index: {}]   ;;  %s1208_s3 = inlined_call_operand.vmem [shape: f32[1,256], index: 3, kind: input, shape index: {}]   ;;  %s1209_s4 = inlined_call_operand.hbm [shape: f32[32,256], index: 4, kind: output, shape index: {}]  }
   0x1   :  { %11 = vsyncpa [#allocation4 + $0x1], 0  ;;  %s987_s15 = smov 0   ;;  %s989_s16 = smov 0  }
   0x2   :  { %s991_s17 = smov 0   ;;  %s993_s18 = smov 0  }
   0x3 LB: > { %s1008_s19 = sadd.s32 4294967295, %s956_s18   ;;  %s752_s20 = sadd.s32 4294967294, %s956_s18   ;;  %s956_s18 = sphi %s993_s18, %s1215_s18   ;;  %s952_s17 = sphi %s991_s17, %s1214_s17   ;;  %s948_s16 = sphi %s989_s16, %s1213_s16   ;;  %s944_s15 = sphi %s987_s15, %s1212_s15  }
   0x4   : > { %s1012_s21 = sadd.s32 1, %s956_s18   ;;  %s45_s22 = sadd.s32 1, %s952_s17 }
   0x5   : > { %s42_s23 = ssub.s32 %s956_s18, %s1012_s21  ;;  %p52_p0 = scmp.ne.s32.totalorder %s952_s17, %s948_s16 }
   0x6   : > { %p43_p1 = scmp.eq.s32.totalorder %s42_s23, 0  ;;  %p53_p2 = scmp.eq.s32.totalorder %s956_s18, 0 }
   0x7   : > { %p134_p3 = scmp.eq.s32.totalorder %s1008_s19, 1  ;;  %p139_p4 = scmp.ne.s32.totalorder %s948_s16, %s944_s15 }
   0x8   : > { %s1024_s24 = scalar_select %p43_p1, %s952_s17, %s45_s22  }
   0x9   : > { %p54_p5 = por %p53_p2, %p52_p0  ;;  %p1026_p6 = por %p134_p3, %p52_p0 }
   0xa   : > { %p140_p7 = scmp.eq.s32.totalorder %s752_s20, 1  ;;  %p754_p9 = scmp.ge.s32.totalorder %s956_s18, 2 }
   0xc   : > { %p1030_p8 = por %p140_p7, %p139_p4  ;;  %159 = sbr.rel (%p754_p9) target bundleno = 44 (0x2c), region = 20 }
  0x13   : > { %162 = sbr.rel (!%p54_p5) target bundleno = 44 (0x2c), region = 24  ;;  %s164_s27 = sand.u32 (%p54_p5), 1, %s952_s17  }
  0x14   : > { %s756_s28 = sshll.u32 (%p54_p5), %s956_s18, 2  ;;  %s755_s29 = sshll.u32 (%p54_p5), %s164_s27, 7 }
  0x15   : > { %s1042_s6 = scalar_lea.vmem (%p54_p5), %s1206_s1, %s756_s28  ;;  %s1046_s7 = scalar_lea.vmem (%p54_p5), [#allocation2], %s755_s29 }
  0x16   : > { %v184_v0 = vld [vmem:[%s1042_s6] sm:$0xf] (%p54_p5)  ;;  %v186_v1 = vld [vmem:[%s1042_s6 + $0x8] sm:$0xf] (%p54_p5)  ;;  %v188_v2 = vld [vmem:[%s1042_s6 + $0x10] sm:$0xf] (%p54_p5) }
  0x17   : > { %185 = vst [vmem:[%s1046_s7] sm:$0xf] (%p54_p5), %v184_v0  ;;  %187 = vst [vmem:[%s1046_s7 + $0x4] sm:$0xf] (%p54_p5), %v186_v1  ;;  %v190_v3 = vld [vmem:[%s1042_s6 + $0x18] sm:$0xf] (%p54_p5) }
  0x18   : > { %v192_v4 = vld [vmem:[%s1042_s6 + $0x20] sm:$0xf] (%p54_p5)  ;;  %189 = vst [vmem:[%s1046_s7 + $0x8] sm:$0xf] (%p54_p5), %v188_v2  ;;  %191 = vst [vmem:[%s1046_s7 + $0xc] sm:$0xf] (%p54_p5), %v190_v3 }
  0x19   : > { %193 = vst [vmem:[%s1046_s7 + $0x10] sm:$0xf] (%p54_p5), %v192_v4  ;;  %v194_v5 = vld [vmem:[%s1042_s6 + $0x28] sm:$0xf] (%p54_p5)  ;;  %v196_v6 = vld [vmem:[%s1042_s6 + $0x30] sm:$0xf] (%p54_p5) }
  0x1a   : > { %v198_v7 = vld [vmem:[%s1042_s6 + $0x38] sm:$0xf]  ;;  %195 = vst [vmem:[%s1046_s7 + $0x14] sm:$0xf] %v194_v5  ;;  %197 = vst [vmem:[%s1046_s7 + $0x18] sm:$0xf] %v196_v6 }
  0x1b   : > { %199 = vst [vmem:[%s1046_s7 + $0x1c] sm:$0xf] %v198_v7  ;;  %v200_v8 = vld [vmem:[%s1042_s6 + $0x40] sm:$0xf]  ;;  %v202_v9 = vld [vmem:[%s1042_s6 + $0x48] sm:$0xf] }
  0x1c   : > { %v204_v10 = vld [vmem:[%s1042_s6 + $0x50] sm:$0xf]  ;;  %201 = vst [vmem:[%s1046_s7 + $0x20] sm:$0xf] %v200_v8  ;;  %203 = vst [vmem:[%s1046_s7 + $0x24] sm:$0xf] %v202_v9 }
  0x1d   : > { %205 = vst [vmem:[%s1046_s7 + $0x28] sm:$0xf] %v204_v10  ;;  %v206_v11 = vld [vmem:[%s1042_s6 + $0x58] sm:$0xf]  ;;  %v208_v12 = vld [vmem:[%s1042_s6 + $0x60] sm:$0xf] }
  0x1e   : > { %v210_v13 = vld [vmem:[%s1042_s6 + $0x68] sm:$0xf]  ;;  %207 = vst [vmem:[%s1046_s7 + $0x2c] sm:$0xf] %v206_v11  ;;  %209 = vst [vmem:[%s1046_s7 + $0x30] sm:$0xf] %v208_v12 }
  0x1f   : > { %211 = vst [vmem:[%s1046_s7 + $0x34] sm:$0xf] %v210_v13  ;;  %v212_v14 = vld [vmem:[%s1042_s6 + $0x70] sm:$0xf]  ;;  %v214_v15 = vld [vmem:[%s1042_s6 + $0x78] sm:$0xf] }
  0x20   : > { %v216_v16 = vld [vmem:[%s1042_s6 + $0x80] sm:$0xf]  ;;  %213 = vst [vmem:[%s1046_s7 + $0x38] sm:$0xf] %v212_v14  ;;  %215 = vst [vmem:[%s1046_s7 + $0x3c] sm:$0xf] %v214_v15 }
  0x21   : > { %217 = vst [vmem:[%s1046_s7 + $0x40] sm:$0xf] %v216_v16  ;;  %v218_v17 = vld [vmem:[%s1042_s6 + $0x88] sm:$0xf]  ;;  %v220_v18 = vld [vmem:[%s1042_s6 + $0x90] sm:$0xf] }
  0x22   : > { %v222_v19 = vld [vmem:[%s1042_s6 + $0x98] sm:$0xf]  ;;  %219 = vst [vmem:[%s1046_s7 + $0x44] sm:$0xf] %v218_v17  ;;  %221 = vst [vmem:[%s1046_s7 + $0x48] sm:$0xf] %v220_v18 }
  0x23   : > { %223 = vst [vmem:[%s1046_s7 + $0x4c] sm:$0xf] %v222_v19  ;;  %v224_v20 = vld [vmem:[%s1042_s6 + $0xa0] sm:$0xf]  ;;  %v226_v21 = vld [vmem:[%s1042_s6 + $0xa8] sm:$0xf] }
  0x24   : > { %v228_v22 = vld [vmem:[%s1042_s6 + $0xb0] sm:$0xf]  ;;  %225 = vst [vmem:[%s1046_s7 + $0x50] sm:$0xf] %v224_v20  ;;  %227 = vst [vmem:[%s1046_s7 + $0x54] sm:$0xf] %v226_v21 }
  0x25   : > { %229 = vst [vmem:[%s1046_s7 + $0x58] sm:$0xf] %v228_v22  ;;  %v230_v23 = vld [vmem:[%s1042_s6 + $0xb8] sm:$0xf]  ;;  %v232_v24 = vld [vmem:[%s1042_s6 + $0xc0] sm:$0xf] }
  0x26   : > { %v234_v25 = vld [vmem:[%s1042_s6 + $0xc8] sm:$0xf]  ;;  %231 = vst [vmem:[%s1046_s7 + $0x5c] sm:$0xf] %v230_v23  ;;  %233 = vst [vmem:[%s1046_s7 + $0x60] sm:$0xf] %v232_v24 }
  0x27   : > { %235 = vst [vmem:[%s1046_s7 + $0x64] sm:$0xf] %v234_v25  ;;  %v236_v26 = vld [vmem:[%s1042_s6 + $0xd0] sm:$0xf]  ;;  %v238_v27 = vld [vmem:[%s1042_s6 + $0xd8] sm:$0xf] }
  0x28   : > { %v240_v28 = vld [vmem:[%s1042_s6 + $0xe0] sm:$0xf]  ;;  %237 = vst [vmem:[%s1046_s7 + $0x68] sm:$0xf] %v236_v26  ;;  %239 = vst [vmem:[%s1046_s7 + $0x6c] sm:$0xf] %v238_v27 }
  0x29   : > { %241 = vst [vmem:[%s1046_s7 + $0x70] sm:$0xf] %v240_v28  ;;  %v242_v29 = vld [vmem:[%s1042_s6 + $0xe8] sm:$0xf]  ;;  %v244_v30 = vld [vmem:[%s1042_s6 + $0xf0] sm:$0xf] }
  0x2a   : > { %v246_v31 = vld [vmem:[%s1042_s6 + $0xf8] sm:$0xf]  ;;  %243 = vst [vmem:[%s1046_s7 + $0x74] sm:$0xf] %v242_v29  ;;  %245 = vst [vmem:[%s1046_s7 + $0x78] sm:$0xf] %v244_v30 }
  0x2b   : > { %247 = vst [vmem:[%s1046_s7 + $0x7c] sm:$0xf] %v246_v31 }
  0x2c PF: > { %p757_p10 = scmp.ge.s32.totalorder %s956_s18, 1  ;;  %p345_p11 = scmp.lt.s32.totalorder %s956_s18, 3 }
  0x2e   : > { %p346_p12 = pnand %p757_p10, %p345_p11 }
  0x2f   : > { %s1113_s8 = sand.u32 (!%p346_p12), 1, %s948_s16   ;;  %v888_v32 = vld [vmem:[%s1205_s0 + $0x4] ss:$8 sps:$4 sm:$0xff] (!%p346_p12)   ;;  %v891_v33 = vld [vmem:[%s1205_s0 + $0x14] ss:$8 sps:$4 sm:$0xff] (!%p346_p12)   ;;  %p383_p13 = scmp.lt.s32.totalorder (!%p346_p12), %s1008_s19, 1  ;;  %v626_v28 = vlaneseq (!%p346_p12) }
  0x30   : > { %349 = sbr.rel (%p346_p12) target bundleno = 368 (0x170), region = 73  ;;  %s758_s9 = sshll.u32 (!%p346_p12), %s1113_s8, 7  ;;  %574 = vmatprep.mubr.bf16.mxu0 (!%p346_p12), %v888_v32  ;;  %582 = vmatprep.mubr.bf16.mxu1 (!%p346_p12), %v891_v33  ;;  %v886_v50 = vld [vmem:[%s1205_s0] ss:$8 sps:$4 sm:$0xff] (!%p346_p12)   ;;  %v889_v51 = vld [vmem:[%s1205_s0 + $0x10] ss:$8 sps:$4 sm:$0xff] (!%p346_p12)  }
  0x31   : > { %s1122_s14 = scalar_lea.vmem (!%p346_p12), [#allocation2], %s758_s9  ;;  %v627_v29 = vshrl.u32 (!%p346_p12), %v626_v28, 7  ;;  %s759_s10 = sshll.u32 (!%p346_p12), %s1113_s8, 5 }
  0x32   : > { %v870_v34 = vld [vmem:[%s1122_s14 + $0x40] sm:$0xff] (!%p346_p12)   ;;  %v872_v36 = vld [vmem:[%s1122_s14 + $0x48] sm:$0xff] (!%p346_p12)   ;;  %v874_v38 = vld [vmem:[%s1122_s14 + $0x50] sm:$0xff] (!%p346_p12)   ;;  %s382_s11 = scalar_lea.vmem (!%p346_p12), [#allocation3], %s759_s10  ;;  %s781_s13 = sshll.u32 (!%p346_p12), %s1008_s19, 7 }
  0x33   : > { %v871_v35 = vld [vmem:[%s1122_s14] sm:$0xff] (!%p346_p12)   ;;  %784 = vmatprep.subr.bf16.mxu0 (!%p346_p12), %v870_v34  ;;  %812 = vmatprep.subr.bf16.mxu1 (!%p346_p12), %v870_v34  ;;  %v873_v37 = vld [vmem:[%s1122_s14 + $0x8] sm:$0xff] (!%p346_p12)   ;;  %v875_v39 = vld [vmem:[%s1122_s14 + $0x10] sm:$0xff] (!%p346_p12)   ;;  %v628_v31 = vsub.s32 (!%p346_p12), 0, %v627_v29  ;;  %s666_s12 = sshll.u32 (!%p346_p12), %s382_s11, 4  ;;  %s1161_s22 = scalar_lea.hbm (!%p346_p12), %s1209_s4, %s781_s13  ;;  %s1156_s12 = int_to_ptr.vmem [resolvable:$true] %s666_s12 }
  0x34   : > { %785 = vmatpush3.bf16.msra.mxu0 (!%p346_p12), %v871_v35  ;;  %820 = vmatpush3.bf16.msra.mxu1 (!%p346_p12), %v871_v35  ;;  %v876_v40 = vld [vmem:[%s1122_s14 + $0x58] sm:$0xff] (!%p346_p12)   ;;  %v878_v42 = vld [vmem:[%s1122_s14 + $0x60] sm:$0xff] (!%p346_p12)   ;;  %v880_v44 = vld [vmem:[%s1122_s14 + $0x68] sm:$0xff] (!%p346_p12)   ;;  %s894_s23 = scalar_lea.vmem (!%p346_p12), %s1156_s12, 512  ;;  %s958_s27 = smov (!%p346_p12), [#allocation3]  }
  0x35   : > { %786 = vmatprep.subr.bf16.mxu0 (!%p346_p12), %v872_v36  ;;  %813 = vmatprep.subr.bf16.mxu1 (!%p346_p12), %v872_v36  ;;  %v877_v41 = vld [vmem:[%s1122_s14 + $0x18] sm:$0xff] (!%p346_p12)   ;;  %v879_v43 = vld [vmem:[%s1122_s14 + $0x20] sm:$0xff] (!%p346_p12)   ;;  %v881_v45 = vld [vmem:[%s1122_s14 + $0x28] sm:$0xff] (!%p346_p12)   ;;  %p895_p0 = scmp.ne.s32.totalorder (!%p346_p12), %s1156_s12, %s894_s23 }
  0x36   : > { %v882_v46 = vld [vmem:[%s1122_s14 + $0x70] sm:$0xff] (!%p346_p12)   ;;  %v884_v48 = vld [vmem:[%s1122_s14 + $0x78] sm:$0xff] (!%p346_p12)  }
  0x37   : > { %v883_v47 = vld [vmem:[%s1122_s14 + $0x30] sm:$0xff]   ;;  %v885_v49 = vld [vmem:[%s1122_s14 + $0x38] sm:$0xff]   ;;  %s384_s28 = scalar_select %p383_p13, %s1008_s19, 1 }
  0x38   : > { %787 = vmatpush3.bf16.msra.mxu0 %v873_v37  ;;  %821 = vmatpush3.bf16.msra.mxu1 %v873_v37  ;;  %s654_s19 = scalar_lea.sflag [#allocation4], %s1113_s8  ;;  %p896_p1 = pnand %p895_p0, %p1026_p6 }
  0x39   : > { %788 = vmatprep.subr.bf16.mxu0 %v874_v38  ;;  %814 = vmatprep.subr.bf16.mxu1 %v874_v38  ;;  %s385_s5 = scalar_lea.vmem %s1207_s2, %s384_s28  ;;  %s388_s9 = scalar_lea.vmem %s1208_s3, %s384_s28 }
  0x3a   : > { %v618_v30 = vld [vmem:[%s385_s5] sm:$0x1]  ;;  %p897_p2 = pneg %p896_p1  ;;  %s898_s28 = sshll.u32 %s958_s27, 4  ;;  %s899_s28 = int_to_ptr.vmem [resolvable:$false] %s898_s28 }
  0x3b   : > { %v622_v34 = vld [vmem:[%s388_s9] sm:$0x1]  ;;  %s900_s29 = scalar_lea.vmem %s899_s28, 1024  ;;  %p901_p3 = scmp.lt.s32.totalorder %s1156_s12, %s899_s28 }
  0x3c   : > { %789 = vmatpush3.bf16.msra.mxu0 %v875_v39  ;;  %822 = vmatpush3.bf16.msra.mxu1 %v875_v39  ;;  %p902_p4 = scmp.lt.s32.totalorder %s900_s29, %s894_s23 }
  0x3d   : > { %790 = vmatprep.subr.bf16.mxu0 %v876_v40  ;;  %815 = vmatprep.subr.bf16.mxu1 %v876_v40 }
  0x3e   : > { %p903_p5 = por %p902_p4, %p901_p3 }
  0x40   : > { %791 = vmatpush3.bf16.msra.mxu0 %v877_v41  ;;  %823 = vmatpush3.bf16.msra.mxu1 %v877_v41  ;;  %p904_p7 = pnand %p903_p5, %p897_p2 }
  0x41   : > { %792 = vmatprep.subr.bf16.mxu0 %v878_v42  ;;  %816 = vmatprep.subr.bf16.mxu1 %v878_v42 }
  0x44   : > { %793 = vmatpush3.bf16.msra.mxu0 %v879_v43  ;;  %824 = vmatpush3.bf16.msra.mxu1 %v879_v43 }
  0x45   : > { %794 = vmatprep.subr.bf16.mxu0 %v880_v44  ;;  %817 = vmatprep.subr.bf16.mxu1 %v880_v44 }
  0x48   : > { %795 = vmatpush3.bf16.msra.mxu0 %v881_v45  ;;  %825 = vmatpush3.bf16.msra.mxu1 %v881_v45 }
  0x49   : > { %796 = vmatprep.subr.bf16.mxu0 %v882_v46  ;;  %818 = vmatprep.subr.bf16.mxu1 %v882_v46 }
  0x4c   : > { %797 = vmatpush3.bf16.msra.mxu0 %v883_v47  ;;  %826 = vmatpush3.bf16.msra.mxu1 %v883_v47 }
  0x4d   : > { %798 = vmatprep.subr.bf16.mxu0 %v884_v48  ;;  %819 = vmatprep.subr.bf16.mxu1 %v884_v48 }
  0x50   : > { %799 = vmatpush3.bf16.msra.mxu0 %v885_v49  ;;  %827 = vmatpush3.bf16.msra.mxu1 %v885_v49 }
  0x53   : > { %575 = vmatmul.mubr.bf16.vlgmr.msra.gmra.mrb[0].mxu0 %v886_v50  ;;  %583 = vmatmul.mubr.bf16.vlgmr.msra.gmra.mrb[0].mxu1 %v889_v51 }
 0x126   : > { %v800_v52 = vpop.f32.mrb[0].mxu0  ;;  %v806_v53 = vpop.f32.mrb[0].mxu1 }
 0x127   : > { %v801_v54 = vpop.f32.mrb[1].mxu0  ;;  %v807_v55 = vpop.f32.mrb[1].mxu1 }
 0x128   : > { %v802_v56 = vadd.f32 %v801_v54, %v800_v52  ;;  %v803_v57 = vpop.f32.mrb[2].mxu0  ;;  %v808_v58 = vadd.f32 %v807_v55, %v806_v53  ;;  %v809_v59 = vpop.f32.mrb[2].mxu1 }
 0x129   : > { %v804_v60 = vpop.f32.mrb[3].mxu0  ;;  %v810_v61 = vpop.f32.mrb[3].mxu1 }
 0x12a   : > { %v805_v62 = vadd.f32 %v804_v60, %v803_v57  ;;  %v811_v63 = vadd.f32 %v810_v61, %v809_v59  ;;  %v600_v0 = vmul.f32 %v802_v56, %v802_v56  ;;  %v602_v1 = vmul.f32 %v808_v58, %v808_v58 }
 0x12c   : > { %v591_v2 = vadd.f32 %v805_v62, %v802_v56  ;;  %v601_v3 = vmul.f32 %v805_v62, %v805_v62  ;;  %v603_v7 = vmul.f32 %v811_v63, %v811_v63 }
 0x12e   : > { %v604_v4 = vadd.f32 %v601_v3, %v600_v0  ;;  %v592_v5 = vadd.f32 %v808_v58, %v591_v2 }
 0x130   : > { %v593_v6 = vadd.f32 %v811_v63, %v592_v5  ;;  %v605_v8 = vadd.f32 %v604_v4, %v602_v1 }
 0x132   : > { %v594_v9 = vrot.slane %v593_v6, 4  ;;  %v606_v10 = vadd.f32 %v605_v8, %v603_v7 }
 0x134   : > { %v595_v11 = vadd.f32 %v594_v9, %v593_v6  ;;  %v607_v12 = vrot.slane %v606_v10, 4 }
 0x136   : > { %v596_v13 = vrot.slane %v595_v11, 2  ;;  %v608_v14 = vadd.f32 %v607_v12, %v606_v10 }
 0x138   : > { %v597_v15 = vadd.f32 %v596_v13, %v595_v11  ;;  %v609_v16 = vrot.slane %v608_v14, 2 }
 0x13a   : > { %v598_v17 = vrot.slane %v597_v15, 1  ;;  %v610_v18 = vadd.f32 %v609_v16, %v608_v14 }
 0x13c   : > { %v599_v19 = vadd.f32 %v598_v17, %v597_v15  ;;  %v611_v20 = vrot.slane %v610_v18, 1 }
 0x13e   : > { %v612_v21 = vadd.f32 %v611_v20, %v610_v18  ;;  %v613_v22 = vmul.f32 0.03125, %v599_v19 }
 0x140   : > { %v614_v23 = vmul.f32 0.03125, %v612_v21  ;;  %v615_v24 = vmul.f32 %v613_v22, %v613_v22 }
 0x142   : > { %v616_v25 = vsub.f32 %v614_v23, %v615_v24 }
 0x144   : > { %v617_v26 = vmax.f32 %v616_v25, 0.0 }
 0x146   : > { %v619_v27 = vadd.f32 1e-05, %v617_v26 }
 0x148   : > { %892 = vrsqrt.f32 %v619_v27 }
 0x152   : > { %v893_v32 = vpop.eup %892 }
 0x153   : > { %v621_v33 = vmul.f32 %v893_v32, %v618_v30 }
 0x155   : > { %v623_v35 = vmul.f32 %v621_v33, %v613_v22  ;;  %v629_v36 = vrot.slane %v621_v33, %v628_v31 }
 0x157   : > { %v624_v37 = vsub.f32 %v622_v34, %v623_v35  ;;  %v631_v38 = vmul.f32 %v802_v56, %v629_v36  ;;  %v632_v39 = vmul.f32 %v805_v62, %v629_v36  ;;  %v633_v40 = vmul.f32 %v808_v58, %v629_v36 }
 0x158   : > { %v634_v41 = vmul.f32 %v811_v63, %v629_v36 }
 0x159   : > { %v639_v42 = vrot.slane %v624_v37, %v628_v31 }
 0x15b   : > { %v641_v43 = vadd.f32 %v639_v42, %v631_v38  ;;  %v642_v44 = vadd.f32 %v639_v42, %v632_v39  ;;  %v643_v45 = vadd.f32 %v639_v42, %v633_v40  ;;  %v644_v46 = vadd.f32 %v639_v42, %v634_v41 }
 0x15d   : > { %v645_v47 = vmax.f32 %v641_v43, 0.0  ;;  %v646_v48 = vmax.f32 %v642_v44, 0.0  ;;  %v647_v49 = vmax.f32 %v643_v45, 0.0  ;;  %v648_v50 = vmax.f32 %v644_v46, 0.0 }
 0x15f   : > { %649 = vst [vmem:[%s382_s11] sm:$0xff] %v645_v47  ;;  %650 = vst [vmem:[%s382_s11 + $0x8] sm:$0xff] %v646_v48 }
 0x160   : > { %651 = vst [vmem:[%s382_s11 + $0x10] sm:$0xff] %v647_v49  ;;  %652 = vst [vmem:[%s382_s11 + $0x18] sm:$0xff] %v648_v50 }
 0x161   : > { %907 = shalt.err (!%p904_p7)
}
 0x162   : > { %s908_s30 = scalar_lea.hbm %s1161_s22, 512  ;;  %s912_s7 = scalar_lea.hbm %s1209_s4, 1024 }
 0x163   : > { %p909_p10 = scmp.ne.s32.totalorder %s1161_s22, %s908_s30  ;;  %p913_p13 = scmp.lt.u32.totalorder %s1161_s22, %s1209_s4 }
 0x164   : > { %p914_p0 = scmp.lt.u32.totalorder %s912_s7, %s908_s30  ;;  %p916_p2 = scmp.lt.u32.totalorder %s908_s30, %s1161_s22 }
 0x165   : > { %p910_p11 = pnand %p909_p10, %p1026_p6 }
 0x166   : > { %p915_p1 = por %p914_p0, %p913_p13 }
 0x167   : > { %p911_p12 = pneg %p910_p11 }
 0x168   : > { %p917_p3 = por %p916_p2, %p915_p1 }
 0x16a   : > { %p918_p4 = pnand %p917_p3, %p911_p12 }
 0x16c   : > { %921 = shalt.err (!%p918_p4)
}
 0x16d   : > { %s959_s11 = smov 128   ;;  %s960_s13 = smov 256  }
 0x16e   : > { %s961_s14 = smov 8  }
 0x16f   : > { %828 = dma.vmem_to_hbm [thread:$0]  (%p1026_p6), %s1156_s12, 512, %s1161_s22, %s654_s19, %s959_s11, %s960_s13, %s961_s14  }
 0x170 PF: > { %s681_s20 = sand.u32 1, %s944_s15   ;;  %p831_p5 = pnand %p754_p9, %p1030_p8 }
 0x171   : > { %s682_s23 = scalar_lea.sflag [#allocation4], %s681_s20 }
 0x172   : > { %939 = dma.done.wait (!%p831_p5), %s682_s23, 512  }
 0x173   : > { %941 = vsyncadd (!%p831_p5), %s682_s23, 4294966784  ;;  %p14_p7 = scmp.ge.s32.totalorder %s1012_s21, 4   ;;  %s1212_s15 = smov %s948_s16 }
 0x174   : > { %s1213_s16 = smov %s952_s17  ;;  %s1214_s17 = smov %s1024_s24 }
 0x175   : > { %s1215_s18 = smov %s1012_s21  ;;  %16 = sbr.rel (!%p14_p7) target bundleno = 3 (0x3), region = 123 }
 0x17c   :  { %687 = vsyncpa [#allocation4], 1 }
 0x17d   :  { %689 = vsyncpa [#allocation4 + $0x1], 1 }

</bundles_post_ra>
